<compile_context>
chip_gen: v7x
topology: tpu7x:2x2x1
jax: 0.10.0
libtpu: 0.0.40
codegen_flags: <defaults>
</compile_context>

<pallas_src>
import functools

import jax
import jax.numpy as jnp
from jax.experimental import pallas as pl
from jax.experimental.pallas import tpu as pltpu

BN_EPS = 1e-5


def _rup8(n):
    return ((n + 7) // 8) * 8


def _bn_relu_train(h, gamma, beta):
    """Training-mode BatchNorm1d folded into one per-element scale/shift,
    fused with the following ReLU. Variance via E[h^2] - m^2 (one sweep)."""
    m = jnp.mean(h, axis=0, keepdims=True)
    v = jnp.mean(h * h, axis=0, keepdims=True) - m * m
    scale = jax.lax.rsqrt(v + BN_EPS) * gamma          # (1, n) row math
    shift = beta - m * scale                           # (1, n) row math
    return jnp.maximum(h * scale + shift, 0.0)         # 2 per-element ops + relu


def vae_kernel(dims, offs, x_ref, noise_ref, p_ref, out_ref, mu_ref, lv_ref):
    D, H0, H1, L = dims

    def mat(name, k, n):          # (k, n) weight block, stored (in, out)
        o = offs[name]
        return p_ref[o:o + k, :n]

    def row(name, n):             # (1, n) row-vector block
        o = offs[name]
        return p_ref[o:o + 1, :n]

    x = x_ref[...]                                                 # (B, D)

    # ---- encoder: [Linear -> BatchNorm1d -> ReLU] x 2 ----
    # Linear biases omitted: cancelled exactly by the BN batch-mean subtraction.
    h = jnp.dot(x, mat("w_e0", D, H0), preferred_element_type=jnp.float32)
    h = _bn_relu_train(h, row("g_e0", H0), row("be_e0", H0))
    h = jnp.dot(h, mat("w_e1", H0, H1), preferred_element_type=jnp.float32)
    h = _bn_relu_train(h, row("g_e1", H1), row("be_e1", H1))

    # ---- mu / logvar heads (true width, stored directly) ----
    mu = (jnp.dot(h, mat("w_mu", H1, L), preferred_element_type=jnp.float32)
          + row("b_mu", L))
    lv = (jnp.dot(h, mat("w_lv", H1, L), preferred_element_type=jnp.float32)
          + row("b_lv", L))
    mu_ref[...] = mu
    lv_ref[...] = lv

    # ---- reparameterize (standard-normal noise supplied from outside) ----
    z = mu + jnp.exp(0.5 * lv) * noise_ref[...]

    # ---- decoder: [Linear -> ReLU] x 2, then Linear ----
    d = jnp.maximum(
        jnp.dot(z, mat("w_d0", L, H1), preferred_element_type=jnp.float32)
        + row("b_d0", H1), 0.0)
    d = jnp.maximum(
        jnp.dot(d, mat("w_d1", H1, H0), preferred_element_type=jnp.float32)
        + row("b_d1", H0), 0.0)
    # Final decoder bias + center_bias omitted: per-feature constants removed
    # exactly by the affine-free post-norm below.
    out = jnp.dot(d, mat("w_d2", H0, D), preferred_element_type=jnp.float32)

    # ---- post_norm: BatchNorm1d(affine=False), training mode ----
    m = jnp.mean(out, axis=0, keepdims=True)
    v = jnp.mean(out * out, axis=0, keepdims=True) - m * m
    out_ref[...] = (out - m) * jax.lax.rsqrt(v + BN_EPS)


def init_params(key, input_dim, hidden_dims, latent_dim):
    """Deterministic synthetic parameters (PyTorch-equivalent).
    Linear weights stored as (in, out); biases / BN params as (1, dim) rows."""
    p = {}

    def dense(key, din, dout):
        kw, kb = jax.random.split(key)
        w = jax.random.normal(kw, (din, dout), jnp.float32) * 0.05
        b = jax.random.normal(kb, (1, dout), jnp.float32) * 0.01
        return w, b

    keys = jax.random.split(key, 8)
    h0, h1 = hidden_dims

    p["w_e0"], p["b_e0"] = dense(keys[0], input_dim, h0)
    p["g_e0"] = jnp.ones((1, h0), jnp.float32)
    p["be_e0"] = jnp.zeros((1, h0), jnp.float32)
    p["w_e1"], p["b_e1"] = dense(keys[1], h0, h1)
    p["g_e1"] = jnp.ones((1, h1), jnp.float32)
    p["be_e1"] = jnp.zeros((1, h1), jnp.float32)

    p["w_mu"], p["b_mu"] = dense(keys[2], h1, latent_dim)
    p["w_lv"], p["b_lv"] = dense(keys[3], h1, latent_dim)

    p["w_d0"], p["b_d0"] = dense(keys[4], latent_dim, h1)
    p["w_d1"], p["b_d1"] = dense(keys[5], h1, h0)
    p["w_d2"], p["b_d2"] = dense(keys[6], h0, input_dim)

    p["center_bias"] = jnp.zeros((1, input_dim), jnp.float32)
    return p


def pack_params(p, input_dim, hidden_dims, latent_dim):
    """Pack every needed weight matrix and row vector into ONE 2-D f32 slab.
    Each block starts at an 8-row-aligned offset; narrow blocks are zero-padded
    to the slab width.  Done once, outside the kernel."""
    h0, h1 = hidden_dims
    width = max(input_dim, h0, h1, latent_dim)

    blocks = [
        ("w_e0", p["w_e0"]),
        ("w_e1", p["w_e1"]),
        ("w_mu", p["w_mu"]), ("w_lv", p["w_lv"]),
        ("w_d0", p["w_d0"]),
        ("w_d1", p["w_d1"]),
        ("w_d2", p["w_d2"]),
        ("g_e0", p["g_e0"]), ("be_e0", p["be_e0"]),
        ("g_e1", p["g_e1"]), ("be_e1", p["be_e1"]),
        ("b_mu", p["b_mu"]), ("b_lv", p["b_lv"]),
        ("b_d0", p["b_d0"]), ("b_d1", p["b_d1"]),
        # b_e0 / b_e1 / b_d2 / center_bias intentionally not packed:
        # cancelled exactly by training-mode BatchNorm mean subtraction.
    ]
    offs, parts, off = {}, [], 0
    for name, a in blocks:
        r, c = a.shape
        rp = _rup8(r)
        parts.append(jnp.pad(a, ((0, rp - r), (0, width - c))))
        offs[name] = off
        off += rp
    slab = jnp.concatenate(parts, axis=0)
    dims = (input_dim, h0, h1, latent_dim)
    return slab, dims, offs


def vae_forward(x, noise, slab, dims, offs):
    """x: (B, input_dim), noise: (B, latent_dim) -> (out, mu, logvar),
    all at true width (no wrapper-side pad/slice ops)."""
    B = x.shape[0]
    D, _, _, L = dims
    vmem = pl.BlockSpec(memory_space=pltpu.MemorySpace.VMEM)
    return pl.pallas_call(
        functools.partial(vae_kernel, dims, offs),
        out_shape=(
            jax.ShapeDtypeStruct((B, D), jnp.float32),
            jax.ShapeDtypeStruct((B, L), jnp.float32),
            jax.ShapeDtypeStruct((B, L), jnp.float32),
        ),
        in_specs=[vmem, vmem, vmem],
        out_specs=(vmem, vmem, vmem),
    )(x, noise, slab)


def vae_reference(x, noise, p):
    """Plain-JAX reference, faithful to the PyTorch module (incl. all biases
    and center_bias, which the batch-stat norms cancel)."""
    def bn(h, g, b):
        m = h.mean(0, keepdims=True)
        v = ((h - m) ** 2).mean(0, keepdims=True)
        return (h - m) / jnp.sqrt(v + BN_EPS) * g + b

    h = jnp.maximum(bn(x @ p["w_e0"] + p["b_e0"], p["g_e0"], p["be_e0"]), 0.0)
    h = jnp.maximum(bn(h @ p["w_e1"] + p["b_e1"], p["g_e1"], p["be_e1"]), 0.0)
    mu = h @ p["w_mu"] + p["b_mu"]
    lv = h @ p["w_lv"] + p["b_lv"]
    z = mu + jnp.exp(0.5 * lv) * noise
    d = jnp.maximum(z @ p["w_d0"] + p["b_d0"], 0.0)
    d = jnp.maximum(d @ p["w_d1"] + p["b_d1"], 0.0)
    out = d @ p["w_d2"] + p["b_d2"] + p["center_bias"]
    m = out.mean(0, keepdims=True)
    v = ((out - m) ** 2).mean(0, keepdims=True)
    return (out - m) / jnp.sqrt(v + BN_EPS), mu, lv


if __name__ == "__main__":
    B = 8
    input_dim = 32
    hidden_dims = (64, 32)
    latent_dim = 16

    key = jax.random.PRNGKey(0)
    k_x, k_noise, k_param = jax.random.split(key, 3)

    x = jax.random.normal(k_x, (B, input_dim), jnp.float32)
    # torch.randn_like(std) equivalent: standard-normal noise generated
    # deterministically in JAX (at true latent width) and passed in.
    noise = jax.random.normal(k_noise, (B, latent_dim), jnp.float32)

    params = init_params(k_param, input_dim, hidden_dims, latent_dim)
    slab, dims, offs = pack_params(params, input_dim, hidden_dims, latent_dim)

    out, mu, lv = vae_forward(x, noise, slab, dims, offs)
    jax.block_until_ready((out, mu, lv))

    # correctness check against pure-JAX reference
    ref_out, ref_mu, ref_lv = vae_reference(x, noise, params)
    assert jnp.allclose(out, ref_out, atol=1e-4, rtol=1e-4)
    assert jnp.allclose(mu, ref_mu, atol=1e-4, rtol=1e-4)
    assert jnp.allclose(lv, ref_lv, atol=1e-4, rtol=1e-4)

    print("KERNEL_OK")
</pallas_src>

<mosaic_0001>
module attributes {stable_mosaic.version = 11 : i64} {
  func.func @vae_kernel(%arg0: memref<8x32xf32, #tpu.memory_space<vmem>>, %arg1: memref<8x16xf32, #tpu.memory_space<vmem>>, %arg2: memref<336x64xf32, #tpu.memory_space<vmem>>, %arg3: memref<8x32xf32, #tpu.memory_space<vmem>>, %arg4: memref<8x16xf32, #tpu.memory_space<vmem>>, %arg5: memref<8x16xf32, #tpu.memory_space<vmem>>) attributes {dimension_semantics = [], scalar_prefetch = 0 : i64, scratch_operands = 0 : i64, tpu.core_type = #tpu.core_type<tc>} {
    %c0 = arith.constant 0 : index
    %c0_0 = arith.constant 0 : index
    %0 = vector.load %arg0[%c0, %c0_0] : memref<8x32xf32, #tpu.memory_space<vmem>>, vector<8x32xf32>
    %c0_1 = arith.constant 0 : index
    %c0_2 = arith.constant 0 : index
    %1 = vector.load %arg2[%c0_1, %c0_2] : memref<336x64xf32, #tpu.memory_space<vmem>>, vector<32x64xf32>
    %cst = arith.constant dense<0.000000e+00> : vector<8x64xf32>
    %2 = tpu.matmul %0, %1, %cst {dimension_numbers = #tpu.dot_dimension_numbers<[1], [0], [0], [1], [0, 0, 1, 1], [], []>} : vector<8x32xf32>, vector<32x64xf32>, vector<8x64xf32> -> vector<8x64xf32>
    %c272 = arith.constant 272 : index
    %c0_3 = arith.constant 0 : index
    %3 = vector.load %arg2[%c272, %c0_3] : memref<336x64xf32, #tpu.memory_space<vmem>>, vector<1x64xf32>
    %c280 = arith.constant 280 : index
    %c0_4 = arith.constant 0 : index
    %4 = vector.load %arg2[%c280, %c0_4] : memref<336x64xf32, #tpu.memory_space<vmem>>, vector<1x64xf32>
    %cst_5 = arith.constant dense<0.000000e+00> : vector<64xf32>
    %5 = vector.multi_reduction <add>, %2, %cst_5 [0] : vector<8x64xf32> to vector<64xf32>
    %6 = vector.shape_cast %5 : vector<64xf32> to vector<1x64xf32>
    %cst_6 = arith.constant 8.000000e+00 : f32
    %7 = vector.broadcast %cst_6 : f32 to vector<1x64xf32>
    %8 = arith.divf %6, %7 : vector<1x64xf32>
    %9 = arith.mulf %2, %2 : vector<8x64xf32>
    %cst_7 = arith.constant dense<0.000000e+00> : vector<64xf32>
    %10 = vector.multi_reduction <add>, %9, %cst_7 [0] : vector<8x64xf32> to vector<64xf32>
    %11 = vector.shape_cast %10 : vector<64xf32> to vector<1x64xf32>
    %cst_8 = arith.constant 8.000000e+00 : f32
    %12 = vector.broadcast %cst_8 : f32 to vector<1x64xf32>
    %13 = arith.divf %11, %12 : vector<1x64xf32>
    %14 = arith.mulf %8, %8 : vector<1x64xf32>
    %15 = arith.subf %13, %14 : vector<1x64xf32>
    %cst_9 = arith.constant 9.99999974E-6 : f32
    %16 = vector.broadcast %cst_9 : f32 to vector<1x64xf32>
    %17 = arith.addf %15, %16 : vector<1x64xf32>
    %18 = math.rsqrt %17 : vector<1x64xf32>
    %19 = arith.mulf %18, %3 : vector<1x64xf32>
    %20 = arith.mulf %8, %19 : vector<1x64xf32>
    %21 = arith.subf %4, %20 : vector<1x64xf32>
    %22 = vector.broadcast %19 : vector<1x64xf32> to vector<8x64xf32>
    %23 = arith.mulf %2, %22 : vector<8x64xf32>
    %24 = vector.broadcast %21 : vector<1x64xf32> to vector<8x64xf32>
    %25 = arith.addf %23, %24 : vector<8x64xf32>
    %cst_10 = arith.constant 0.000000e+00 : f32
    %26 = vector.broadcast %cst_10 : f32 to vector<8x64xf32>
    %27 = arith.maximumf %25, %26 : vector<8x64xf32>
    %c32 = arith.constant 32 : index
    %c0_11 = arith.constant 0 : index
    %28 = vector.load %arg2[%c32, %c0_11] : memref<336x64xf32, #tpu.memory_space<vmem>>, vector<64x32xf32>
    %cst_12 = arith.constant dense<0.000000e+00> : vector<8x32xf32>
    %29 = tpu.matmul %27, %28, %cst_12 {dimension_numbers = #tpu.dot_dimension_numbers<[1], [0], [0], [1], [0, 0, 1, 1], [], []>} : vector<8x64xf32>, vector<64x32xf32>, vector<8x32xf32> -> vector<8x32xf32>
    %c288 = arith.constant 288 : index
    %c0_13 = arith.constant 0 : index
    %30 = vector.load %arg2[%c288, %c0_13] : memref<336x64xf32, #tpu.memory_space<vmem>>, vector<1x32xf32>
    %c296 = arith.constant 296 : index
    %c0_14 = arith.constant 0 : index
    %31 = vector.load %arg2[%c296, %c0_14] : memref<336x64xf32, #tpu.memory_space<vmem>>, vector<1x32xf32>
    %cst_15 = arith.constant dense<0.000000e+00> : vector<32xf32>
    %32 = vector.multi_reduction <add>, %29, %cst_15 [0] : vector<8x32xf32> to vector<32xf32>
    %33 = vector.shape_cast %32 : vector<32xf32> to vector<1x32xf32>
    %cst_16 = arith.constant 8.000000e+00 : f32
    %34 = vector.broadcast %cst_16 : f32 to vector<1x32xf32>
    %35 = arith.divf %33, %34 : vector<1x32xf32>
    %36 = arith.mulf %29, %29 : vector<8x32xf32>
    %cst_17 = arith.constant dense<0.000000e+00> : vector<32xf32>
    %37 = vector.multi_reduction <add>, %36, %cst_17 [0] : vector<8x32xf32> to vector<32xf32>
    %38 = vector.shape_cast %37 : vector<32xf32> to vector<1x32xf32>
    %cst_18 = arith.constant 8.000000e+00 : f32
    %39 = vector.broadcast %cst_18 : f32 to vector<1x32xf32>
    %40 = arith.divf %38, %39 : vector<1x32xf32>
    %41 = arith.mulf %35, %35 : vector<1x32xf32>
    %42 = arith.subf %40, %41 : vector<1x32xf32>
    %cst_19 = arith.constant 9.99999974E-6 : f32
    %43 = vector.broadcast %cst_19 : f32 to vector<1x32xf32>
    %44 = arith.addf %42, %43 : vector<1x32xf32>
    %45 = math.rsqrt %44 : vector<1x32xf32>
    %46 = arith.mulf %45, %30 : vector<1x32xf32>
    %47 = arith.mulf %35, %46 : vector<1x32xf32>
    %48 = arith.subf %31, %47 : vector<1x32xf32>
    %49 = vector.broadcast %46 : vector<1x32xf32> to vector<8x32xf32>
    %50 = arith.mulf %29, %49 : vector<8x32xf32>
    %51 = vector.broadcast %48 : vector<1x32xf32> to vector<8x32xf32>
    %52 = arith.addf %50, %51 : vector<8x32xf32>
    %cst_20 = arith.constant 0.000000e+00 : f32
    %53 = vector.broadcast %cst_20 : f32 to vector<8x32xf32>
    %54 = arith.maximumf %52, %53 : vector<8x32xf32>
    %c96 = arith.constant 96 : index
    %c0_21 = arith.constant 0 : index
    %55 = vector.load %arg2[%c96, %c0_21] : memref<336x64xf32, #tpu.memory_space<vmem>>, vector<32x16xf32>
    %cst_22 = arith.constant dense<0.000000e+00> : vector<8x16xf32>
    %56 = tpu.matmul %54, %55, %cst_22 {dimension_numbers = #tpu.dot_dimension_numbers<[1], [0], [0], [1], [0, 0, 1, 1], [], []>} : vector<8x32xf32>, vector<32x16xf32>, vector<8x16xf32> -> vector<8x16xf32>
    %c304 = arith.constant 304 : index
    %c0_23 = arith.constant 0 : index
    %57 = vector.load %arg2[%c304, %c0_23] : memref<336x64xf32, #tpu.memory_space<vmem>>, vector<1x16xf32>
    %58 = vector.broadcast %57 : vector<1x16xf32> to vector<8x16xf32>
    %59 = arith.addf %56, %58 : vector<8x16xf32>
    %c128 = arith.constant 128 : index
    %c0_24 = arith.constant 0 : index
    %60 = vector.load %arg2[%c128, %c0_24] : memref<336x64xf32, #tpu.memory_space<vmem>>, vector<32x16xf32>
    %cst_25 = arith.constant dense<0.000000e+00> : vector<8x16xf32>
    %61 = tpu.matmul %54, %60, %cst_25 {dimension_numbers = #tpu.dot_dimension_numbers<[1], [0], [0], [1], [0, 0, 1, 1], [], []>} : vector<8x32xf32>, vector<32x16xf32>, vector<8x16xf32> -> vector<8x16xf32>
    %c312 = arith.constant 312 : index
    %c0_26 = arith.constant 0 : index
    %62 = vector.load %arg2[%c312, %c0_26] : memref<336x64xf32, #tpu.memory_space<vmem>>, vector<1x16xf32>
    %63 = vector.broadcast %62 : vector<1x16xf32> to vector<8x16xf32>
    %64 = arith.addf %61, %63 : vector<8x16xf32>
    %c0_27 = arith.constant 0 : index
    %c0_28 = arith.constant 0 : index
    %65 = vector.load %arg4[%c0_27, %c0_28] : memref<8x16xf32, #tpu.memory_space<vmem>>, vector<8x16xf32>
    tpu.vector_store %arg4[%c0_27, %c0_28], %59 {strides = array<i32>} : memref<8x16xf32, #tpu.memory_space<vmem>>, vector<8x16xf32>,
    %c0_29 = arith.constant 0 : index
    %c0_30 = arith.constant 0 : index
    %66 = vector.load %arg5[%c0_29, %c0_30] : memref<8x16xf32, #tpu.memory_space<vmem>>, vector<8x16xf32>
    tpu.vector_store %arg5[%c0_29, %c0_30], %64 {strides = array<i32>} : memref<8x16xf32, #tpu.memory_space<vmem>>, vector<8x16xf32>,
    %cst_31 = arith.constant 5.000000e-01 : f32
    %67 = vector.broadcast %cst_31 : f32 to vector<8x16xf32>
    %68 = arith.mulf %67, %64 : vector<8x16xf32>
    %69 = math.exp %68 : vector<8x16xf32>
    %c0_32 = arith.constant 0 : index
    %c0_33 = arith.constant 0 : index
    %70 = vector.load %arg1[%c0_32, %c0_33] : memref<8x16xf32, #tpu.memory_space<vmem>>, vector<8x16xf32>
    %71 = arith.mulf %69, %70 : vector<8x16xf32>
    %72 = arith.addf %59, %71 : vector<8x16xf32>
    %c160 = arith.constant 160 : index
    %c0_34 = arith.constant 0 : index
    %73 = vector.load %arg2[%c160, %c0_34] : memref<336x64xf32, #tpu.memory_space<vmem>>, vector<16x32xf32>
    %cst_35 = arith.constant dense<0.000000e+00> : vector<8x32xf32>
    %74 = tpu.matmul %72, %73, %cst_35 {dimension_numbers = #tpu.dot_dimension_numbers<[1], [0], [0], [1], [0, 0, 1, 1], [], []>} : vector<8x16xf32>, vector<16x32xf32>, vector<8x32xf32> -> vector<8x32xf32>
    %c320 = arith.constant 320 : index
    %c0_36 = arith.constant 0 : index
    %75 = vector.load %arg2[%c320, %c0_36] : memref<336x64xf32, #tpu.memory_space<vmem>>, vector<1x32xf32>
    %76 = vector.broadcast %75 : vector<1x32xf32> to vector<8x32xf32>
    %77 = arith.addf %74, %76 : vector<8x32xf32>
    %cst_37 = arith.constant 0.000000e+00 : f32
    %78 = vector.broadcast %cst_37 : f32 to vector<8x32xf32>
    %79 = arith.maximumf %77, %78 : vector<8x32xf32>
    %c176 = arith.constant 176 : index
    %c0_38 = arith.constant 0 : index
    %80 = vector.load %arg2[%c176, %c0_38] : memref<336x64xf32, #tpu.memory_space<vmem>>, vector<32x64xf32>
    %cst_39 = arith.constant dense<0.000000e+00> : vector<8x64xf32>
    %81 = tpu.matmul %79, %80, %cst_39 {dimension_numbers = #tpu.dot_dimension_numbers<[1], [0], [0], [1], [0, 0, 1, 1], [], []>} : vector<8x32xf32>, vector<32x64xf32>, vector<8x64xf32> -> vector<8x64xf32>
    %c328 = arith.constant 328 : index
    %c0_40 = arith.constant 0 : index
    %82 = vector.load %arg2[%c328, %c0_40] : memref<336x64xf32, #tpu.memory_space<vmem>>, vector<1x64xf32>
    %83 = vector.broadcast %82 : vector<1x64xf32> to vector<8x64xf32>
    %84 = arith.addf %81, %83 : vector<8x64xf32>
    %cst_41 = arith.constant 0.000000e+00 : f32
    %85 = vector.broadcast %cst_41 : f32 to vector<8x64xf32>
    %86 = arith.maximumf %84, %85 : vector<8x64xf32>
    %c208 = arith.constant 208 : index
    %c0_42 = arith.constant 0 : index
    %87 = vector.load %arg2[%c208, %c0_42] : memref<336x64xf32, #tpu.memory_space<vmem>>, vector<64x32xf32>
    %cst_43 = arith.constant dense<0.000000e+00> : vector<8x32xf32>
    %88 = tpu.matmul %86, %87, %cst_43 {dimension_numbers = #tpu.dot_dimension_numbers<[1], [0], [0], [1], [0, 0, 1, 1], [], []>} : vector<8x64xf32>, vector<64x32xf32>, vector<8x32xf32> -> vector<8x32xf32>
    %cst_44 = arith.constant dense<0.000000e+00> : vector<32xf32>
    %89 = vector.multi_reduction <add>, %88, %cst_44 [0] : vector<8x32xf32> to vector<32xf32>
    %90 = vector.shape_cast %89 : vector<32xf32> to vector<1x32xf32>
    %cst_45 = arith.constant 8.000000e+00 : f32
    %91 = vector.broadcast %cst_45 : f32 to vector<1x32xf32>
    %92 = arith.divf %90, %91 : vector<1x32xf32>
    %93 = arith.mulf %88, %88 : vector<8x32xf32>
    %cst_46 = arith.constant dense<0.000000e+00> : vector<32xf32>
    %94 = vector.multi_reduction <add>, %93, %cst_46 [0] : vector<8x32xf32> to vector<32xf32>
    %95 = vector.shape_cast %94 : vector<32xf32> to vector<1x32xf32>
    %cst_47 = arith.constant 8.000000e+00 : f32
    %96 = vector.broadcast %cst_47 : f32 to vector<1x32xf32>
    %97 = arith.divf %95, %96 : vector<1x32xf32>
    %98 = arith.mulf %92, %92 : vector<1x32xf32>
    %99 = arith.subf %97, %98 : vector<1x32xf32>
    %100 = vector.broadcast %92 : vector<1x32xf32> to vector<8x32xf32>
    %101 = arith.subf %88, %100 : vector<8x32xf32>
    %cst_48 = arith.constant 9.99999974E-6 : f32
    %102 = vector.broadcast %cst_48 : f32 to vector<1x32xf32>
    %103 = arith.addf %99, %102 : vector<1x32xf32>
    %104 = math.rsqrt %103 : vector<1x32xf32>
    %105 = vector.broadcast %104 : vector<1x32xf32> to vector<8x32xf32>
    %106 = arith.mulf %101, %105 : vector<8x32xf32>
    %c0_49 = arith.constant 0 : index
    %c0_50 = arith.constant 0 : index
    %107 = vector.load %arg3[%c0_49, %c0_50] : memref<8x32xf32, #tpu.memory_space<vmem>>, vector<8x32xf32>
    tpu.vector_store %arg3[%c0_49, %c0_50], %106 {strides = array<i32>} : memref<8x32xf32, #tpu.memory_space<vmem>>, vector<8x32xf32>,
    return
  }
}

</mosaic_0001>

<bundles_post_ra>
// kernel: tpu_custom_call.1
= control target key start
LH: loop header
LB: loop body
LE: loop exit
PB: predicated region body
PF: predicated region fallthrough
CT: control target
= control target key end

     0   :  { %11 = vsyncpa [#allocation3], 0  ;;  %v1011_v3 = vmov 0.0|0.0   ;;  %vm1012_vm0 = vmmov 0   ;;  %v1013_v6 = vmov 0.0   ;;  %s1262_s0 = inlined_call_operand.vmem [shape: f32[8,32], index: 0, kind: input, shape index: {}]   ;;  %s1263_s1 = inlined_call_operand.vmem [shape: f32[8,16], index: 1, kind: input, shape index: {}]   ;;  %s1264_s2 = inlined_call_operand.vmem [shape: f32[336,64], index: 2, kind: input, shape index: {}]   ;;  %s1265_s3 = inlined_call_operand.hbm [shape: f32[8,32], index: 3, kind: output, shape index: {0}]   ;;  %s1266_s4 = inlined_call_operand.hbm [shape: f32[8,16], index: 4, kind: output, shape index: {1}]   ;;  %s1267_s5 = inlined_call_operand.hbm [shape: f32[8,16], index: 5, kind: output, shape index: {2}]  }
   0x1   :  { %v20_v0 = vld [vmem:[%s1264_s2] sm:$0xff]  ;;  %v21_v1 = vld [vmem:[%s1264_s2 + $0x8] sm:$0xff]  ;;  %v22_v2 = vld [vmem:[%s1264_s2 + $0x10] sm:$0xff]  ;;  %876 = vmatprep.subr.bf16.mxu1 %v1011_v3  ;;  %795 = vmatprep.mubr.msk.f32.mxu1 %vm1012_vm0, %v1013_v6 }
   0x2   :  { %v877_v4 = vpack.c.bf16 %v21_v1, %v20_v0  ;;  %v23_v5 = vld [vmem:[%s1264_s2 + $0x18] sm:$0xff] }
   0x3   :  { %12 = vsyncpa [#allocation5], 0  ;;  %894 = vmatprep.subr.bf16.mxu0 %v1011_v3  ;;  %825 = vmatprep.mubr.msk.f32.mxu0 %vm1012_vm0, %v1013_v6  ;;  %v880_v7 = vpack.c.bf16 %v23_v5, %v22_v2  ;;  %v19_v8 = vld [vmem:[%s1262_s0] sm:$0xff]  ;;  %vm24_vm1 = vcmask 261120   ;;  %v138_v10 = vld [vmem:[%s1264_s2 + $0x28] sm:$0xff]  ;;  %vm100_vm2 = vcmask 523264   ;;  %v126_v43 = vlaneseq }
   0x4   :  { %878 = vmatpush3.bf16.msra.mxu1 %v877_v4  ;;  %v137_v9 = vld [vmem:[%s1264_s2 + $0x20] sm:$0xff]  ;;  %v139_v12 = vld [vmem:[%s1264_s2 + $0x30] sm:$0xff]  ;;  %v140_v13 = vld [vmem:[%s1264_s2 + $0x38] sm:$0xff]  ;;  %vm416_vm3 = vcmask 130048   ;;  %s1014_s27 = smov [#allocation4]  }
   0x5   :  { %879 = vmatprep.subr.bf16.mxu1 %v1011_v3  ;;  %v883_v11 = vpack.c.bf16 %v138_v10, %v137_v9  ;;  %v886_v14 = vpack.c.bf16 %v140_v13, %v139_v12  ;;  %v141_v15 = vld [vmem:[%s1264_s2 + $0x40] sm:$0xff]  ;;  %v142_v16 = vld [vmem:[%s1264_s2 + $0x48] sm:$0xff]  ;;  %v143_v18 = vld [vmem:[%s1264_s2 + $0x50] sm:$0xff]  ;;  %v127_v44 = vshrl.u32 %v126_v43, 7  ;;  %s710_s28 = sshll.u32 %s1014_s27, 4  ;;  %s711_s28 = int_to_ptr.vmem [resolvable:$true] %s710_s28 }
   0x6   :  { %v889_v17 = vpack.c.bf16 %v142_v16, %v141_v15  ;;  %v144_v19 = vld [vmem:[%s1264_s2 + $0x58] sm:$0xff]  ;;  %v98_v45 = vld [vmem:[%s1264_s2 + $0x110] sm:$0x1]  ;;  %v255_v57 = vld [vmem:[%s1264_s2 + $0x60] sm:$0xff]  ;;  %s941_s29 = scalar_lea.vmem %s711_s28, 128  ;;  %p946_p1 = scmp.lt.s32.totalorder %s711_s28, %s711_s28 }
   0x7   :  { %v892_v20 = vpack.c.bf16 %v144_v19, %v143_v18  ;;  %v128_v46 = vsub.s32 0, %v127_v44  ;;  %v99_v49 = vld [vmem:[%s1264_s2 + $0x118] sm:$0x1]  ;;  %v256_v58 = vld [vmem:[%s1264_s2 + $0x68] sm:$0xff]  ;;  %v257_v60 = vld [vmem:[%s1264_s2 + $0x70] sm:$0xff]  ;;  %p942_p0 = scmp.ne.s32.totalorder %s711_s28, %s941_s29  ;;  %p947_p2 = scmp.lt.s32.totalorder %s941_s29, %s941_s29 }
   0x8   :  { %881 = vmatpush3.bf16.msra.mxu1 %v880_v7  ;;  %v895_v59 = vpack.c.bf16 %v256_v58, %v255_v57  ;;  %v258_v61 = vld [vmem:[%s1264_s2 + $0x78] sm:$0xff]  ;;  %v737_v43 = vld [vmem:[%s1264_s2 + $0x130] ss:$0 sm:$0xff] }
   0x9   :  { %882 = vmatprep.subr.bf16.mxu1 %v1011_v3  ;;  %v898_v62 = vpack.c.bf16 %v258_v61, %v257_v60  ;;  %v508_v60 = vld [vmem:[%s1264_s2 + $0xc0] sm:$0xff]  ;;  %v509_v61 = vld [vmem:[%s1264_s2 + $0xc8] sm:$0xff]  ;;  %p948_p3 = por %p947_p2, %p946_p1 }
   0xa   :  { %896 = vmatpush3.bf16.msra.mxu0 %v895_v59 }
   0xb   :  { %796 = vmatmul.mubr.msk.f32.vlgmr.msra.gmra.mrb[0].mxu1 %vm24_vm1, %v19_v8  ;;  %897 = vmatprep.subr.bf16.mxu0 %v1011_v3  ;;  %p949_p4 = pnand %p948_p3, %p942_p0 }
   0xc   :  { %814 = vmatprep.mubr.msk.f32.mxu1 %vm1012_vm0, %v1013_v6  ;;  %884 = vmatpush3.bf16.msra.mxu1 %v883_v11 }
   0xd   :  { %885 = vmatprep.subr.bf16.mxu1 %v1011_v3 }
   0xe   :  { %899 = vmatpush3.bf16.msra.mxu0 %v898_v62  ;;  %v913_v62 = vpack.c.bf16 %v509_v61, %v508_v60 }
   0xf   :  { %900 = vmatprep.subr.bf16.mxu0 %v1011_v3 }
  0x10   :  { %887 = vmatpush3.bf16.msra.mxu1 %v886_v14 }
  0x11   :  { %888 = vmatprep.subr.bf16.mxu1 %v1011_v3 }
  0x14   :  { %890 = vmatpush3.bf16.msra.mxu1 %v889_v17 }
  0x15   :  { %891 = vmatprep.subr.bf16.mxu1 %v1011_v3 }
  0x18   :  { %893 = vmatpush3.bf16.msra.mxu1 %v892_v20 }
  0x19   :  { %906 = vmatprep.subr.bf16.mxu1 %v1011_v3 }
  0xde   :  { %v94_v21 = vpop.f32.mrb[0].mxu1 }
  0xdf   :  { %v101_v22 = vsel %vm100_vm2, %v94_v21, 0.0  ;;  %v110_v23 = vmul.f32 %v94_v21, %v94_v21  ;;  %v797_v24 = vpop.f32.mrb[1].mxu1 }
  0xe0   :  { %v102_v25 = vrot.slane %v101_v22, 4 }
  0xe1   :  { %v111_v26 = vsel %vm100_vm2, %v110_v23, 0.0  ;;  %v218_v23 = vld [vmem:[%s1264_s2 + $0x120] sm:$0x1] }
  0xe2   :  { %v103_v27 = vadd.f32 %v102_v25, %v101_v22  ;;  %v112_v28 = vrot.slane %v111_v26, 4 }
  0xe4   :  { %v104_v29 = vrot.slane %v103_v27, 2  ;;  %v113_v30 = vadd.f32 %v112_v28, %v111_v26  ;;  %v219_v26 = vld [vmem:[%s1264_s2 + $0x128] sm:$0x1] }
  0xe6   :  { %v105_v31 = vadd.f32 %v104_v29, %v103_v27  ;;  %v114_v32 = vrot.slane %v113_v30, 2 }
  0xe8   :  { %v106_v33 = vrot.slane %v105_v31, 1  ;;  %v115_v34 = vadd.f32 %v114_v32, %v113_v30  ;;  %v337_v32 = vld [vmem:[%s1264_s2 + $0x80] sm:$0xff] }
  0xea   :  { %v107_v35 = vadd.f32 %v106_v33, %v105_v31  ;;  %v116_v36 = vrot.slane %v115_v34, 1  ;;  %v338_v33 = vld [vmem:[%s1264_s2 + $0x88] sm:$0xff] }
  0xec   :  { %v109_v37 = vmul.f32 0.125, %v107_v35  ;;  %v117_v38 = vadd.f32 %v116_v36, %v115_v34  ;;  %v901_v35 = vpack.c.bf16 %v338_v33, %v337_v32 }
  0xee   :  { %v118_v39 = vmul.f32 0.125, %v117_v38  ;;  %v119_v40 = vmul.f32 %v109_v37, %v109_v37  ;;  %v340_v38 = vld [vmem:[%s1264_s2 + $0x98] sm:$0xff] }
  0xf0   :  { %v120_v41 = vsub.f32 %v118_v39, %v119_v40  ;;  %v425_v40 = vld [vmem:[%s1264_s2 + $0xa0] sm:$0xff] }
  0xf2   :  { %v121_v42 = vadd.f32 1e-05, %v120_v41  ;;  %v426_v41 = vld [vmem:[%s1264_s2 + $0xa8] sm:$0xff] }
  0xf4   :  { %933 = vrsqrt.f32 %v121_v42  ;;  %v907_v42 = vpack.c.bf16 %v426_v41, %v425_v40 }
  0xfe   :  { %v934_v47 = vpop.eup %933 }
  0xff   :  { %v123_v48 = vmul.f32 %v934_v47, %v98_v45  ;;  %v739_v47 = vld [vmem:[%s1264_s2 + $0x138] ss:$0 sm:$0xff] }
 0x101   :  { %v124_v50 = vmul.f32 %v123_v48, %v109_v37  ;;  %v129_v51 = vrot.slane %v123_v48, %v128_v46  ;;  %v339_v37 = vld [vmem:[%s1264_s2 + $0x90] sm:$0xff] }
 0x102   :  { %v904_v39 = vpack.c.bf16 %v340_v38, %v339_v37 }
 0x103   :  { %v125_v52 = vsub.f32 %v99_v49, %v124_v50  ;;  %v130_v53 = vmul.f32 %v129_v51, %v94_v21 }
 0x105   :  { %v134_v54 = vrot.slane %v125_v52, %v128_v46 }
 0x107   :  { %v135_v55 = vadd.f32 %v134_v54, %v130_v53  ;;  %v422_v53 = vld [vmem:[%s1263_s1] sm:$0xff]  ;;  %v506_v54 = vld [vmem:[%s1264_s2 + $0xb0] sm:$0xff] }
 0x109   :  { %v136_v56 = vmax.f32 %v135_v55, 0.0  ;;  %v507_v55 = vld [vmem:[%s1264_s2 + $0xb8] sm:$0xff] }
 0x10a   :  { %v910_v58 = vpack.c.bf16 %v507_v55, %v506_v54 }
 0x10b   :  { %815 = vmatmul.mubr.msk.f32.vlgmr.msra.gmra.mrb[2].mxu1 %vm100_vm2, %v136_v56 }
 0x10c   :  { %843 = vmatprep.mubr.msk.f32.mxu1 %vm1012_vm0, %v1013_v6  ;;  %908 = vmatpush3.bf16.msra.mxu1 %v907_v42 }
 0x10d   :  { %909 = vmatprep.subr.bf16.mxu1 %v1011_v3 }
 0x1de   :  { %v214_v63 = vpop.f32.mrb[2].mxu1 }
 0x1df   :  { %v220_v0 = vsel %vm24_vm1, %v214_v63, 0.0  ;;  %v228_v1 = vmul.f32 %v214_v63, %v214_v63  ;;  %v816_v2 = vpop.f32.mrb[3].mxu1 }
 0x1e0   :  { %v221_v4 = vrot.slane %v220_v0, 4  ;;  %v592_v2 = vld [vmem:[%s1264_s2 + $0xe8] sm:$0xff] }
 0x1e1   :  { %v229_v5 = vsel %vm24_vm1, %v228_v1, 0.0 }
 0x1e2   :  { %v222_v7 = vadd.f32 %v221_v4, %v220_v0  ;;  %v230_v8 = vrot.slane %v229_v5, 4  ;;  %v591_v0 = vld [vmem:[%s1264_s2 + $0xe0] sm:$0xff] }
 0x1e3   :  { %v919_v4 = vpack.c.bf16 %v592_v2, %v591_v0 }
 0x1e4   :  { %v223_v9 = vrot.slane %v222_v7, 2  ;;  %v231_v10 = vadd.f32 %v230_v8, %v229_v5  ;;  %v593_v5 = vld [vmem:[%s1264_s2 + $0xf0] sm:$0xff] }
 0x1e6   :  { %v224_v11 = vadd.f32 %v223_v9, %v222_v7  ;;  %v232_v12 = vrot.slane %v231_v10, 2  ;;  %v594_v7 = vld [vmem:[%s1264_s2 + $0xf8] sm:$0xff]  ;;  %v741_v9 = vld [vmem:[%s1264_s2 + $0x140] ss:$0 sm:$0xff] }
 0x1e7   :  { %v922_v8 = vpack.c.bf16 %v594_v7, %v593_v5 }
 0x1e8   :  { %v225_v13 = vrot.slane %v224_v11, 1  ;;  %v233_v14 = vadd.f32 %v232_v12, %v231_v10 }
 0x1ea   :  { %v226_v15 = vadd.f32 %v225_v13, %v224_v11  ;;  %v234_v16 = vrot.slane %v233_v14, 1 }
 0x1ec   :  { %v227_v17 = vmul.f32 0.125, %v226_v15  ;;  %v235_v18 = vadd.f32 %v234_v16, %v233_v14  ;;  %v595_v14 = vld [vmem:[%s1264_s2 + $0x100] sm:$0xff]  ;;  %v596_v15 = vld [vmem:[%s1264_s2 + $0x108] sm:$0xff] }
 0x1ed   :  { %v925_v16 = vpack.c.bf16 %v596_v15, %v595_v14 }
 0x1ee   :  { %v236_v19 = vmul.f32 0.125, %v235_v18  ;;  %v237_v20 = vmul.f32 %v227_v17, %v227_v17 }
 0x1f0   :  { %v238_v21 = vsub.f32 %v236_v19, %v237_v20 }
 0x1f2   :  { %v239_v22 = vadd.f32 1e-05, %v238_v21 }
 0x1f4   :  { %935 = vrsqrt.f32 %v239_v22 }
 0x1fe   :  { %v936_v24 = vpop.eup %935 }
 0x1ff   :  { %v241_v25 = vmul.f32 %v936_v24, %v218_v23 }
 0x201   :  { %v242_v27 = vmul.f32 %v241_v25, %v227_v17  ;;  %v247_v28 = vrot.slane %v241_v25, %v128_v46 }
 0x203   :  { %v243_v29 = vsub.f32 %v219_v26, %v242_v27  ;;  %v248_v30 = vmul.f32 %v247_v28, %v214_v63  ;;  %v589_v63 = vld [vmem:[%s1264_s2 + $0xd0] sm:$0xff] }
 0x205   :  { %v252_v31 = vrot.slane %v243_v29, %v128_v46 }
 0x207   :  { %v253_v34 = vadd.f32 %v252_v31, %v248_v30 }
 0x209   :  { %v254_v36 = vmax.f32 %v253_v34, 0.0 }
 0x20b   :  { %826 = vmatmul.mubr.msk.f32.vlgmr.msra.gmra.mrb[0].mxu0 %vm24_vm1, %v254_v36 }
 0x20c   :  { %902 = vmatpush3.bf16.msra.mxu0 %v901_v35  ;;  %836 = vmatprep.mubr.msk.f32.mxu0 %vm1012_vm0, %v1013_v6 }
 0x20d   :  { %903 = vmatprep.subr.bf16.mxu0 %v1011_v3 }
 0x210   :  { %905 = vmatpush3.bf16.msra.mxu0 %v904_v39 }
 0x211   :  { %915 = vmatprep.subr.bf16.mxu0 %v1011_v3 }
 0x213   :  { %837 = vmatmul.mubr.msk.f32.vlgmr.msra.gmra.mrb[2].mxu0 %vm24_vm1, %v254_v36 }
 0x214   :  { %873 = vmatprep.mubr.msk.f32.mxu0 %vm1012_vm0, %v1013_v6 }
 0x2de   :  { %v333_v44 = vpop.f32.mrb[0].mxu0 }
 0x2df   :  { %v334_v45 = vadd.f32 %v737_v43, %v333_v44  ;;  %v827_v46 = vpop.f32.mrb[1].mxu0 }
 0x2e1   :  { %417 = vst.msk [vmem:[#allocation4] sm:$0xff] %vm416_vm3, %v334_v45 }
 0x2e6   :  { %v412_v48 = vpop.f32.mrb[2].mxu0 }
 0x2e7   :  { %v413_v49 = vadd.f32 %v739_v47, %v412_v48  ;;  %v838_v50 = vpop.f32.mrb[3].mxu0 }
 0x2e9   :  { %v419_v51 = vmul.f32 0.5, %v413_v49  ;;  %418 = vst.msk [vmem:[#allocation6] sm:$0xff] %vm416_vm3, %v413_v49 }
 0x2eb   :  { %v420_v52 = vmul.f32 1.442695, %v419_v51 }
 0x2ed   :  { %937 = vpow2.f32 %v420_v52 }
 0x2f7   :  { %v938_v56 = vpop.eup %937 }
 0x2f8   :  { %v423_v57 = vmul.f32 %v938_v56, %v422_v53 }
 0x2fa   :  { %v424_v59 = vadd.f32 %v423_v57, %v334_v45 }
 0x2fc   :  { %844 = vmatmul.mubr.msk.f32.vlgmr.msra.gmra.mrb[4].mxu1 %vm416_vm3, %v424_v59 }
 0x2fd   :  { %911 = vmatpush3.bf16.msra.mxu1 %v910_v58  ;;  %854 = vmatprep.mubr.msk.f32.mxu1 %vm1012_vm0, %v1013_v6  ;;  %v590_v6 = vld [vmem:[%s1264_s2 + $0xd8] sm:$0xff] }
 0x2fe   :  { %912 = vmatprep.subr.bf16.mxu1 %v1011_v3  ;;  %v916_v1 = vpack.c.bf16 %v590_v6, %v589_v63 }
 0x300   :  { %917 = vmatpush3.bf16.msra.mxu0 %v916_v1 }
 0x301   :  { %914 = vmatpush3.bf16.msra.mxu1 %v913_v62  ;;  %918 = vmatprep.subr.bf16.mxu0 %v1011_v3 }
 0x304   :  { %920 = vmatpush3.bf16.msra.mxu0 %v919_v4 }
 0x305   :  { %921 = vmatprep.subr.bf16.mxu0 %v1011_v3 }
 0x308   :  { %923 = vmatpush3.bf16.msra.mxu0 %v922_v8 }
 0x309   :  { %924 = vmatprep.subr.bf16.mxu0 %v1011_v3  ;;  %v743_v3 = vld [vmem:[%s1264_s2 + $0x148] ss:$0 sm:$0xff] }
 0x30c   :  { %926 = vmatpush3.bf16.msra.mxu0 %v925_v16 }
 0x3cf   :  { %v501_v10 = vpop.f32.mrb[4].mxu1 }
 0x3d0   :  { %v502_v11 = vadd.f32 %v741_v9, %v501_v10  ;;  %v845_v12 = vpop.f32.mrb[5].mxu1 }
 0x3d2   :  { %v505_v13 = vmax.f32 %v502_v11, 0.0 }
 0x3d4   :  { %855 = vmatmul.mubr.msk.f32.vlgmr.msra.gmra.mrb[6].mxu1 %vm24_vm1, %v505_v13 }
 0x4a7   :  { %v584_v17 = vpop.f32.mrb[6].mxu1 }
 0x4a8   :  { %v585_v18 = vadd.f32 %v743_v3, %v584_v17  ;;  %v856_v19 = vpop.f32.mrb[7].mxu1 }
 0x4aa   :  { %v588_v20 = vmax.f32 %v585_v18, 0.0 }
 0x4ac   :  { %874 = vmatmul.mubr.msk.f32.vlgmr.msra.gmra.mrb[4].mxu0 %vm100_vm2, %v588_v20 }
 0x4ad   :  { %952 = shalt.err (!%p949_p4)
}
 0x4ae   :  { %s953_s2 = scalar_lea.hbm %s1266_s4, 128 }
 0x4af   :  { %p954_p5 = scmp.ne.s32.totalorder %s1266_s4, %s953_s2  ;;  %p957_p6 = scmp.lt.u32.totalorder %s953_s2, %s1266_s4 }
 0x4b1   :  { %p959_p7 = pnand %p957_p6, %p954_p5 }
 0x4b3   :  { %962 = shalt.err (!%p959_p7)
}
 0x4b4   :  { %713 = dma.vmem_to_hbm [thread:$0]  %s711_s28, 128, %s1266_s4, [#allocation5]  }
 0x4b5   :  { %s1015_s11 = smov [#allocation6]  }
 0x4b6   :  { %s720_s12 = sshll.u32 %s1015_s11, 4  ;;  %s721_s12 = int_to_ptr.vmem [resolvable:$true] %s720_s12 }
 0x4b7   :  { %s963_s13 = scalar_lea.vmem %s721_s12, 128  ;;  %p968_p9 = scmp.lt.s32.totalorder %s721_s12, %s721_s12 }
 0x4b8   :  { %p964_p8 = scmp.ne.s32.totalorder %s721_s12, %s963_s13  ;;  %p969_p10 = scmp.lt.s32.totalorder %s963_s13, %s963_s13 }
 0x4ba   :  { %p970_p11 = por %p969_p10, %p968_p9 }
 0x4bc   :  { %p971_p12 = pnand %p970_p11, %p964_p8 }
 0x4be   :  { %974 = shalt.err (!%p971_p12)
}
 0x4bf   :  { %s975_s16 = scalar_lea.hbm %s1267_s5, 128 }
 0x4c0   :  { %p976_p13 = scmp.ne.s32.totalorder %s1267_s5, %s975_s16  ;;  %p979_p0 = scmp.lt.u32.totalorder %s975_s16, %s1267_s5 }
 0x4c2   :  { %p981_p1 = pnand %p979_p0, %p976_p13 }
 0x4c4   :  { %984 = shalt.err (!%p981_p1)
}
 0x4c5   :  { %723 = dma.vmem_to_hbm [thread:$0]  %s721_s12, 128, %s1267_s5, [#allocation5]  }
 0x4c6   :  { %s1016_s5 = smov [#allocation2]  }
 0x4c7   :  { %s700_s22 = sshll.u32 %s1016_s5, 4  ;;  %s701_s22 = int_to_ptr.vmem [resolvable:$true] %s700_s22 }
 0x4c8   :  { %s985_s23 = scalar_lea.vmem %s701_s22, 128  ;;  %p990_p3 = scmp.lt.s32.totalorder %s701_s22, %s701_s22 }
 0x4c9   :  { %p986_p2 = scmp.ne.s32.totalorder %s701_s22, %s985_s23  ;;  %p991_p4 = scmp.lt.s32.totalorder %s985_s23, %s985_s23 }
 0x4cb   :  { %p992_p5 = por %p991_p4, %p990_p3 }
 0x4cd   :  { %p993_p6 = pnand %p992_p5, %p986_p2 }
 0x57f   :  { %v666_v21 = vpop.f32.mrb[4].mxu0 }
 0x580   :  { %v670_v22 = vsel %vm24_vm1, %v666_v21, 0.0  ;;  %v678_v23 = vmul.f32 %v666_v21, %v666_v21  ;;  %v875_v24 = vpop.f32.mrb[5].mxu0 }
 0x581   :  { %v671_v25 = vrot.slane %v670_v22, 4 }
 0x582   :  { %v679_v26 = vsel %vm24_vm1, %v678_v23, 0.0 }
 0x583   :  { %v672_v27 = vadd.f32 %v671_v25, %v670_v22  ;;  %v680_v28 = vrot.slane %v679_v26, 4 }
 0x585   :  { %v673_v29 = vrot.slane %v672_v27, 2  ;;  %v681_v30 = vadd.f32 %v680_v28, %v679_v26 }
 0x587   :  { %v674_v31 = vadd.f32 %v673_v29, %v672_v27  ;;  %v682_v32 = vrot.slane %v681_v30, 2 }
 0x589   :  { %v675_v33 = vrot.slane %v674_v31, 1  ;;  %v683_v34 = vadd.f32 %v682_v32, %v681_v30 }
 0x58b   :  { %v676_v35 = vadd.f32 %v675_v33, %v674_v31  ;;  %v684_v36 = vrot.slane %v683_v34, 1 }
 0x58d   :  { %v677_v37 = vmul.f32 0.125, %v676_v35  ;;  %v685_v38 = vadd.f32 %v684_v36, %v683_v34 }
 0x58f   :  { %v686_v39 = vmul.f32 0.125, %v685_v38  ;;  %v687_v40 = vmul.f32 %v677_v37, %v677_v37  ;;  %v689_v43 = vsub.f32 %v666_v21, %v677_v37 }
 0x591   :  { %v688_v41 = vsub.f32 %v686_v39, %v687_v40 }
 0x593   :  { %v690_v42 = vadd.f32 1e-05, %v688_v41 }
 0x595   :  { %939 = vrsqrt.f32 %v690_v42 }
 0x59f   :  { %v940_v44 = vpop.eup %939 }
 0x5a0   :  { %v692_v45 = vmul.f32 %v940_v44, %v689_v43 }
 0x5a2   :  { %693 = vst.msk [vmem:[#allocation2] sm:$0xff] %vm24_vm1, %v692_v45 }
 0x5a3   :  { %996 = shalt.err (!%p993_p6)
}
 0x5a4   :  { %s997_s26 = scalar_lea.hbm %s1265_s3, 128 }
 0x5a5   :  { %p998_p7 = scmp.ne.s32.totalorder %s1265_s3, %s997_s26  ;;  %p1001_p8 = scmp.lt.u32.totalorder %s997_s26, %s1265_s3 }
 0x5a7   :  { %p1003_p9 = pnand %p1001_p8, %p998_p7 }
 0x5a9   :  { %1006 = shalt.err (!%p1003_p9)
}
 0x5aa   :  { %703 = dma.vmem_to_hbm [thread:$0]  %s701_s22, 128, %s1265_s3, [#allocation3]  }
 0x5ab   :  { %1007 = dma.done.wait [#allocation3], 128  }
 0x5ac   :  { %1008 = vsyncadd [#allocation3], 4294967168 }
 0x5ad   :  { %1009 = dma.done.wait [#allocation5], 256  }
 0x5ae   :  { %1010 = vsyncadd [#allocation5], 4294967040 }
 0x5af   :  { %733 = vsyncpa [#allocation3], 1 }
 0x5b0   :  { %734 = vsyncpa [#allocation5], 1 }

</bundles_post_ra>
